<compile_context>
chip_gen: v5e
topology: v5e:2x2
jax: 0.10.0
libtpu: 0.0.40
codegen_flags: <defaults>
</compile_context>

<pallas_src>
import jax
import jax.numpy as jnp
from jax.experimental import pallas as pl
from jax.experimental.pallas import tpu as pltpu


def _linear_softmax_kernel(x_ref, w_ref, b_ref, o_ref):
    # x_ref: (TB, 784) caller dtype   w_ref: (784, 10) bf16
    # b_ref: (1, 10) f32              o_ref: (TB, 10) f32
    x = x_ref[...].astype(jnp.bfloat16)          # in-VMEM cast -> single MXU pass
    logits = jnp.dot(x, w_ref[...], preferred_element_type=jnp.float32)
    logits = logits + b_ref[...]                 # broadcast (1,10) over rows

    # numerically-stable softmax along dim=1 (rows); exact normalization
    # (division cost is hidden under the x DMA — kernel is bandwidth bound).
    m = jnp.max(logits, axis=1, keepdims=True)
    e = jnp.exp(logits - m)
    denom = jnp.sum(e, axis=1, keepdims=True)
    o_ref[...] = (e / denom).astype(o_ref.dtype)


def _round_up(n, m):
    return ((n + m - 1) // m) * m


def neural_network_forward(x_nchw, W, b, *, block_b=2048):
    """x_nchw: (B, 1, 28, 28) float -> (B, 10) float32 softmax probabilities."""
    B = x_nchw.shape[0]
    x_flat = x_nchw.reshape(B, -1)               # nn.Flatten()
    D, C = W.shape                               # (784, 10)

    w_bf16 = W.astype(jnp.bfloat16)              # 16 KB, VMEM-resident
    b2d = b.reshape(1, C).astype(jnp.float32)

    # Sublane alignment only: pad batch to a multiple of 8 when needed (<=7 rows).
    B8 = _round_up(B, 8)
    if B8 != B:
        x_flat = jnp.pad(x_flat, ((0, B8 - B), (0, 0)))

    TB = min(block_b, B8)                        # TB % 8 == 0, TB <= B8
    n_blocks = pl.cdiv(B8, TB)                   # ragged last block handled by Pallas

    itemsize = x_flat.dtype.itemsize
    cost = pl.CostEstimate(
        flops=2 * B8 * D * C,
        transcendentals=B8 * C,
        bytes_accessed=B8 * D * itemsize + D * C * 2 + C * 4 + B8 * C * 4,
    )

    out = pl.pallas_call(
        _linear_softmax_kernel,
        out_shape=jax.ShapeDtypeStruct((B8, C), jnp.float32),
        grid=(n_blocks,),
        in_specs=[
            pl.BlockSpec((TB, D), lambda i: (i, 0)),   # streamed batch tiles
            pl.BlockSpec((D, C), lambda i: (0, 0)),    # W: VMEM-resident
            pl.BlockSpec((1, C), lambda i: (0, 0)),    # b: VMEM-resident
        ],
        out_specs=pl.BlockSpec((TB, C), lambda i: (i, 0)),
        compiler_params=pltpu.CompilerParams(
            dimension_semantics=("parallel",),         # batch tiles independent
            vmem_limit_bytes=48 << 20,                 # allow TB=2048 f32 stream on v5e
        ),
        cost_estimate=cost,
    )(x_flat, w_bf16, b2d)

    return out[:B] if B8 != B else out


if __name__ == "__main__":
    key = jax.random.PRNGKey(0)
    k_x, k_w = jax.random.split(key)

    # MNIST-like batch: (B, 1, 28, 28) so flatten gives 784 features.
    B = 2
    x = jax.random.normal(k_x, (B, 1, 28, 28), dtype=jnp.float32)

    # Parameters as in the module __init__: W = randn(784, 10), b = zeros(10)
    W = jax.random.normal(k_w, (784, 10), dtype=jnp.float32)
    b = jnp.zeros((10,), dtype=jnp.float32)

    y = neural_network_forward(x, W, b)
    jax.block_until_ready(y)

    # Reference matched to the kernel's compute path: bf16 operands,
    # f32 accumulation, exact softmax normalization.
    x_flat = x.reshape(B, -1)
    logits_ref = jnp.dot(
        x_flat.astype(jnp.bfloat16), W.astype(jnp.bfloat16),
        preferred_element_type=jnp.float32) + b
    ref = jax.nn.softmax(logits_ref, axis=1)

    assert y.shape == (B, 10)
    assert y.dtype == jnp.float32
    assert jnp.allclose(y, ref, atol=2e-3, rtol=2e-3)
    assert jnp.allclose(jnp.sum(y, axis=1), jnp.ones((B,), jnp.float32), atol=1e-3)

    print("KERNEL_OK")
</pallas_src>

<mosaic_0001>
module attributes {stable_mosaic.version = 11 : i64} {
  func.func @_linear_softmax_kernel(%arg0: i32, %arg1: memref<8x784xf32, #tpu.memory_space<vmem>>, %arg2: memref<784x10xbf16, #tpu.memory_space<vmem>>, %arg3: memref<1x10xf32, #tpu.memory_space<vmem>>, %arg4: memref<8x10xf32, #tpu.memory_space<vmem>>) attributes {dimension_semantics = [#tpu.dimension_semantics<parallel>], iteration_bounds = array<i64: 1>, scalar_prefetch = 0 : i64, scratch_operands = 0 : i64, tpu.core_type = #tpu.core_type<tc>, window_params = [{transform_indices = @transform_0, window_bounds = array<i64: 8, 784>}, {pipeline_mode = #tpu.pipeline_mode<synchronous>, transform_indices = @transform_1, window_bounds = array<i64: 784, 10>}, {pipeline_mode = #tpu.pipeline_mode<synchronous>, transform_indices = @transform_2, window_bounds = array<i64: 1, 10>}, {transform_indices = @transform_3, window_bounds = array<i64: 8, 10>}]} {
    %c0 = arith.constant 0 : index
    %c0_0 = arith.constant 0 : index
    %0 = vector.load %arg1[%c0, %c0_0] : memref<8x784xf32, #tpu.memory_space<vmem>>, vector<8x784xf32>
    %1 = arith.truncf %0 : vector<8x784xf32> to vector<8x784xbf16>
    %c0_1 = arith.constant 0 : index
    %c0_2 = arith.constant 0 : index
    %2 = vector.load %arg2[%c0_1, %c0_2] : memref<784x10xbf16, #tpu.memory_space<vmem>>, vector<784x10xbf16>
    %cst = arith.constant dense<0.000000e+00> : vector<8x10xf32>
    %3 = tpu.matmul %1, %2, %cst {dimension_numbers = #tpu.dot_dimension_numbers<[1], [0], [0], [1], [0, 0, 1, 1], [], []>} : vector<8x784xbf16>, vector<784x10xbf16>, vector<8x10xf32> -> vector<8x10xf32>
    %c0_3 = arith.constant 0 : index
    %c0_4 = arith.constant 0 : index
    %4 = vector.load %arg3[%c0_3, %c0_4] : memref<1x10xf32, #tpu.memory_space<vmem>>, vector<1x10xf32>
    %5 = vector.broadcast %4 : vector<1x10xf32> to vector<8x10xf32>
    %6 = arith.addf %3, %5 : vector<8x10xf32>
    %cst_5 = arith.constant dense<0xFF800000> : vector<8xf32>
    %7 = vector.multi_reduction <maximumf>, %6, %cst_5 [1] : vector<8x10xf32> to vector<8xf32>
    %8 = vector.shape_cast %7 : vector<8xf32> to vector<8x1xf32>
    %9 = vector.broadcast %8 : vector<8x1xf32> to vector<8x10xf32>
    %10 = arith.subf %6, %9 : vector<8x10xf32>
    %11 = math.exp %10 : vector<8x10xf32>
    %cst_6 = arith.constant dense<0.000000e+00> : vector<8xf32>
    %12 = vector.multi_reduction <add>, %11, %cst_6 [1] : vector<8x10xf32> to vector<8xf32>
    %13 = vector.shape_cast %12 : vector<8xf32> to vector<8x1xf32>
    %14 = vector.broadcast %13 : vector<8x1xf32> to vector<8x10xf32>
    %15 = arith.divf %11, %14 : vector<8x10xf32>
    %c0_7 = arith.constant 0 : index
    %c0_8 = arith.constant 0 : index
    %16 = vector.load %arg4[%c0_7, %c0_8] : memref<8x10xf32, #tpu.memory_space<vmem>>, vector<8x10xf32>
    tpu.vector_store %arg4[%c0_7, %c0_8], %15 {strides = array<i32>} : memref<8x10xf32, #tpu.memory_space<vmem>>, vector<8x10xf32>,
    return
  }
  func.func @transform_0(%arg0: i32) -> (i32, i32) {
    %c0_i32 = arith.constant 0 : i32
    %c0_i32_0 = arith.constant 0 : i32
    return %arg0, %c0_i32 : i32, i32
  }
  func.func @transform_1(%arg0: i32) -> (i32, i32) {
    %c0_i32 = arith.constant 0 : i32
    %c0_i32_0 = arith.constant 0 : i32
    %c0_i32_1 = arith.constant 0 : i32
    return %c0_i32, %c0_i32_0 : i32, i32
  }
  func.func @transform_2(%arg0: i32) -> (i32, i32) {
    %c0_i32 = arith.constant 0 : i32
    %c0_i32_0 = arith.constant 0 : i32
    %c0_i32_1 = arith.constant 0 : i32
    return %c0_i32, %c0_i32_0 : i32, i32
  }
  func.func @transform_3(%arg0: i32) -> (i32, i32) {
    %c0_i32 = arith.constant 0 : i32
    %c0_i32_0 = arith.constant 0 : i32
    return %arg0, %c0_i32 : i32, i32
  }
}

</mosaic_0001>

<bundles_post_ra>
// kernel: tpu_custom_call.1
= control target key start
LH: loop header
LB: loop body
LE: loop exit
PB: predicated region body
PF: predicated region fallthrough
CT: control target
= control target key end

     0   :  { %s1039_s0 = inlined_call_operand.vmem [shape: f32[8,784], index: 0, kind: input, shape index: {}]   ;;  %s1040_s1 = inlined_call_operand.vmem [shape: bf16[784,10], index: 1, kind: input, shape index: {}]   ;;  %s1041_s2 = inlined_call_operand.vmem [shape: f32[1,10], index: 2, kind: input, shape index: {}]   ;;  %s1042_s3 = inlined_call_operand.hbm [shape: f32[8,10], index: 3, kind: output, shape index: {}]  }
   0x1   :  { %v767_v0 = vld [vmem:[%s1040_s1 + $0x38] sm:$0xff]  ;;  %v766_v3 = vld [vmem:[%s1040_s1 + $0x30] sm:$0xff]  ;;  %v765_v8 = vld [vmem:[%s1040_s1 + $0x28] sm:$0xff] }
   0x2   :  { %v775_v1 = vld [vmem:[%s1040_s1 + $0x78] sm:$0xff]  ;;  %430 = vmatpush.bf16.msra.mxu0 %v767_v0  ;;  %v774_v4 = vld [vmem:[%s1040_s1 + $0x70] sm:$0xff]  ;;  %v773_v9 = vld [vmem:[%s1040_s1 + $0x68] sm:$0xff] }
   0x3   :  { %v783_v2 = vld [vmem:[%s1040_s1 + $0xb8] sm:$0xff]  ;;  %443 = vmatpush.bf16.msra.mxu1 %v775_v1  ;;  %v782_v5 = vld [vmem:[%s1040_s1 + $0xb0] sm:$0xff]  ;;  %v781_v10 = vld [vmem:[%s1040_s1 + $0xa8] sm:$0xff] }
   0x4   :  { %456 = vmatpush.bf16.msra.mxu2 %v783_v2  ;;  %v791_v6 = vld [vmem:[%s1040_s1 + $0xf8] sm:$0xff]  ;;  %v790_v7 = vld [vmem:[%s1040_s1 + $0xf0] sm:$0xff]  ;;  %v789_v11 = vld [vmem:[%s1040_s1 + $0xe8] sm:$0xff] }
   0x5   :  { %469 = vmatpush.bf16.msra.mxu3 %v791_v6  ;;  %v764_v12 = vld [vmem:[%s1040_s1 + $0x20] sm:$0xff]  ;;  %v763_v16 = vld [vmem:[%s1040_s1 + $0x18] sm:$0xff] }
   0x6   :  { %431 = vmatpush.bf16.msra.mxu0 %v766_v3  ;;  %v772_v13 = vld [vmem:[%s1040_s1 + $0x60] sm:$0xff]  ;;  %v771_v17 = vld [vmem:[%s1040_s1 + $0x58] sm:$0xff] }
   0x7   :  { %444 = vmatpush.bf16.msra.mxu1 %v774_v4  ;;  %v780_v14 = vld [vmem:[%s1040_s1 + $0xa0] sm:$0xff]  ;;  %v779_v18 = vld [vmem:[%s1040_s1 + $0x98] sm:$0xff] }
   0x8   :  { %457 = vmatpush.bf16.msra.mxu2 %v782_v5  ;;  %v788_v15 = vld [vmem:[%s1040_s1 + $0xe0] sm:$0xff] }
   0x9   :  { %470 = vmatpush.bf16.msra.mxu3 %v790_v7 }
   0xa   :  { %432 = vmatpush.bf16.msra.mxu0 %v765_v8 }
   0xb   :  { %445 = vmatpush.bf16.msra.mxu1 %v773_v9 }
   0xc   :  { %458 = vmatpush.bf16.msra.mxu2 %v781_v10 }
   0xd   :  { %471 = vmatpush.bf16.msra.mxu3 %v789_v11 }
   0xe   :  { %433 = vmatpush.bf16.msra.mxu0 %v764_v12 }
   0xf   :  { %446 = vmatpush.bf16.msra.mxu1 %v772_v13 }
  0x10   :  { %459 = vmatpush.bf16.msra.mxu2 %v780_v14 }
  0x11   :  { %8 = vsyncpa [#allocation3], 0  ;;  %472 = vmatpush.bf16.msra.mxu3 %v788_v15  ;;  %v787_v19 = vld [vmem:[%s1040_s1 + $0xd8] sm:$0xff]  ;;  %v762_v20 = vld [vmem:[%s1040_s1 + $0x10] sm:$0xff]  ;;  %vm426_vm0 = vcmask 130048   ;;  %vm521_vm1 = vcmask 80896  }
  0x12   :  { %434 = vmatpush.bf16.msra.mxu0 %v763_v16  ;;  %v770_v21 = vld [vmem:[%s1040_s1 + $0x50] sm:$0xff]  ;;  %v761_v24 = vld [vmem:[%s1040_s1 + $0x8] sm:$0xff]  ;;  %v760_v27 = vld [vmem:[%s1040_s1] sm:$0xff]  ;;  %s554_s19 = sshll.u32 %s1042_s3, 4  ;;  %s555_s19 = int_to_ptr.hbm [resolvable:$true] %s554_s19 }
  0x13   :  { %447 = vmatpush.bf16.msra.mxu1 %v771_v17  ;;  %v778_v22 = vld [vmem:[%s1040_s1 + $0x90] sm:$0xff]  ;;  %v769_v25 = vld [vmem:[%s1040_s1 + $0x48] sm:$0xff]  ;;  %v768_v29 = vld [vmem:[%s1040_s1 + $0x40] sm:$0xff] }
  0x14   :  { %460 = vmatpush.bf16.msra.mxu2 %v779_v18  ;;  %v786_v23 = vld [vmem:[%s1040_s1 + $0xd0] sm:$0xff]  ;;  %v777_v26 = vld [vmem:[%s1040_s1 + $0x88] sm:$0xff]  ;;  %v16_v30 = vld [vmem:[%s1039_s0] sm:$0xff] }
  0x15   :  { %473 = vmatpush.bf16.msra.mxu3 %v787_v19  ;;  %v785_v28 = vld [vmem:[%s1040_s1 + $0xc8] sm:$0xff]  ;;  %v799_v32 = vld [vmem:[%s1040_s1 + $0x138] sm:$0xff]  ;;  %v776_v34 = vld [vmem:[%s1040_s1 + $0x80] sm:$0xff]  ;;  %v23_v36 = vpack.c.bf16 %v16_v30, %v16_v30 }
  0x16   :  { %435 = vmatpush.bf16.msra.mxu0 %v762_v20  ;;  %v17_v31 = vld [vmem:[%s1039_s0 + $0x8] sm:$0xff]  ;;  %v807_v33 = vld [vmem:[%s1040_s1 + $0x178] sm:$0xff]  ;;  %v18_v35 = vld [vmem:[%s1039_s0 + $0x10] sm:$0xff] }
  0x17   :  { %448 = vmatpush.bf16.msra.mxu1 %v770_v21  ;;  %v24_v37 = vpack.c.bf16 %v17_v31, %v17_v31  ;;  %v784_v38 = vld [vmem:[%s1040_s1 + $0xc0] sm:$0xff]  ;;  %v19_v40 = vld [vmem:[%s1039_s0 + $0x18] sm:$0xff]  ;;  %v798_v41 = vld [vmem:[%s1040_s1 + $0x130] sm:$0xff]  ;;  %v25_v43 = vpack.c.bf16 %v18_v35, %v18_v35 }
  0x18   :  { %461 = vmatpush.bf16.msra.mxu2 %v778_v22  ;;  %v808_v39 = vld [vmem:[%s1040_s1 + $0x180] sm:$0xff]  ;;  %v806_v42 = vld [vmem:[%s1040_s1 + $0x170] sm:$0xff]  ;;  %v26_v44 = vpack.c.bf16 %v19_v40, %v19_v40  ;;  %v797_v45 = vld [vmem:[%s1040_s1 + $0x128] sm:$0xff] }
  0x19   :  { %474 = vmatpush.bf16.msra.mxu3 %v786_v23  ;;  %v805_v46 = vld [vmem:[%s1040_s1 + $0x168] sm:$0xff]  ;;  %v796_v47 = vld [vmem:[%s1040_s1 + $0x120] sm:$0xff]  ;;  %v795_v49 = vld [vmem:[%s1040_s1 + $0x118] sm:$0xff] }
  0x1a   :  { %436 = vmatpush.bf16.msra.mxu0 %v761_v24  ;;  %v804_v48 = vld [vmem:[%s1040_s1 + $0x160] sm:$0xff]  ;;  %v803_v50 = vld [vmem:[%s1040_s1 + $0x158] sm:$0xff]  ;;  %v22_v51 = vld [vmem:[%s1039_s0 + $0x30] sm:$0xff] }
  0x1b   :  { %449 = vmatpush.bf16.msra.mxu1 %v769_v25  ;;  %v794_v52 = vld [vmem:[%s1040_s1 + $0x110] sm:$0xff]  ;;  %v29_v54 = vpack.c.bf16 %v22_v51, %v22_v51  ;;  %v793_v55 = vld [vmem:[%s1040_s1 + $0x108] sm:$0xff]  ;;  %v792_v57 = vld [vmem:[%s1040_s1 + $0x100] sm:$0xff] }
  0x1c   :  { %462 = vmatpush.bf16.msra.mxu2 %v777_v26  ;;  %v802_v53 = vld [vmem:[%s1040_s1 + $0x150] sm:$0xff]  ;;  %v801_v56 = vld [vmem:[%s1040_s1 + $0x148] sm:$0xff]  ;;  %v800_v58 = vld [vmem:[%s1040_s1 + $0x140] sm:$0xff] }
  0x1d   :  { %475 = vmatpush.bf16.msra.mxu3 %v785_v28  ;;  %v20_v59 = vld [vmem:[%s1039_s0 + $0x20] sm:$0xff]  ;;  %v21_v60 = vld [vmem:[%s1039_s0 + $0x28] sm:$0xff]  ;;  %s841_s0 = smov [#allocation2]  }
  0x1e   :  { %437 = vmatpush.bf16.msra.mxu0 %v760_v27  ;;  %v27_v61 = vpack.c.bf16 %v20_v59, %v20_v59  ;;  %v28_v62 = vpack.c.bf16 %v21_v60, %v21_v60  ;;  %v810_v5 = vld [vmem:[%s1041_s2] ss:$0 sm:$0xff]  ;;  %s552_s2 = sshll.u32 %s841_s0, 4  ;;  %s553_s2 = int_to_ptr.vmem [resolvable:$true] %s552_s2 }
  0x1f   :  { %450 = vmatpush.bf16.msra.mxu1 %v768_v29 }
  0x20   :  { %463 = vmatpush.bf16.msra.mxu2 %v776_v34 }
  0x21   :  { %438 = vmatmul.bf16.vlgmr.msra.gmra.mxu0 %v23_v36  ;;  %476 = vmatpush.bf16.msra.mxu3 %v784_v38 }
  0x22   :  { %482 = vmatpush.bf16.msrb.mxu0 %v799_v32  ;;  %451 = vmatmul.bf16.vlgmr.msra.gmra.mxu1 %v24_v37 }
  0x23   :  { %495 = vmatpush.bf16.msrb.mxu1 %v807_v33  ;;  %464 = vmatmul.bf16.vlgmr.msra.gmra.mxu2 %v25_v43 }
  0x24   :  { %515 = vmatpush.bf16.msrb.mxu2 %v808_v39  ;;  %477 = vmatmul.bf16.vlgmr.msra.gmra.mxu3 %v26_v44 }
  0x26   :  { %483 = vmatpush.bf16.msrb.mxu0 %v798_v41 }
  0x27   :  { %496 = vmatpush.bf16.msrb.mxu1 %v806_v42 }
  0x2a   :  { %484 = vmatpush.bf16.msrb.mxu0 %v797_v45 }
  0x2b   :  { %497 = vmatpush.bf16.msrb.mxu1 %v805_v46 }
  0x2e   :  { %485 = vmatpush.bf16.msrb.mxu0 %v796_v47 }
  0x2f   :  { %498 = vmatpush.bf16.msrb.mxu1 %v804_v48 }
  0x32   :  { %486 = vmatpush.bf16.msrb.mxu0 %v795_v49 }
  0x33   :  { %499 = vmatpush.bf16.msrb.mxu1 %v803_v50  ;;  %759 = vmatmul.msk.bf16.vlgmr.msrb.gmra.mxu2 %vm426_vm0, %v29_v54 }
  0x36   :  { %487 = vmatpush.bf16.msrb.mxu0 %v794_v52 }
  0x37   :  { %500 = vmatpush.bf16.msrb.mxu1 %v802_v53 }
  0x3a   :  { %488 = vmatpush.bf16.msrb.mxu0 %v793_v55 }
  0x3b   :  { %501 = vmatpush.bf16.msrb.mxu1 %v801_v56 }
  0x3e   :  { %489 = vmatpush.bf16.msrb.mxu0 %v792_v57 }
  0x3f   :  { %502 = vmatpush.bf16.msrb.mxu1 %v800_v58 }
  0x41   :  { %490 = vmatmul.bf16.vlgmr.msrb.gmra.mxu0 %v27_v61 }
  0x42   :  { %503 = vmatmul.bf16.vlgmr.msrb.gmra.mxu1 %v28_v62 }
  0x9e   :  { %v439_v63 = vpop.f32.mrf.mxu0 }
  0x9f   :  { %v452_v0 = vpop.f32.mrf.mxu1  ;;  %v440_v6 = vadd.f32 %v810_v5, %v439_v63 }
  0xa1   :  { %v453_v9 = vadd.f32 %v452_v0, %v440_v6 }
  0xa6   :  { %v441_v1 = vpop.f32.mrf.mxu0  ;;  %v465_v3 = vpop.f32.mrf.mxu2 }
  0xa7   :  { %v454_v2 = vpop.f32.mrf.mxu1  ;;  %v478_v4 = vpop.f32.mrf.mxu3  ;;  %v466_v10 = vadd.f32 %v465_v3, %v453_v9 }
  0xa9   :  { %v479_v12 = vadd.f32 %v478_v4, %v466_v10 }
  0xae   :  { %v467_v7 = vpop.f32.mrf.mxu2 }
  0xaf   :  { %v480_v8 = vpop.f32.mrf.mxu3 }
  0xb6   :  { %v517_v11 = vpop.f32.mrf.mxu2 }
  0xbe   :  { %v491_v13 = vpop.f32.mrf.mxu0  ;;  %v519_v17 = vpop.f32.mrf.mxu2 }
  0xbf   :  { %v504_v14 = vpop.f32.mrf.mxu1  ;;  %v492_v15 = vadd.f32 %v491_v13, %v479_v12 }
  0xc1   :  { %v505_v16 = vadd.f32 %v504_v14, %v492_v15 }
  0xc3   :  { %v518_v18 = vadd.f32 %v517_v11, %v505_v16 }
  0xc5   :  { %v522_v19 = vsel %vm521_vm1, %v518_v18, -inf }
  0xc6   :  { %v493_v20 = vpop.f32.mrf.mxu0  ;;  %523 = vmax.xlane.f32.xlu0 %v522_v19 }
  0xc7   :  { %v506_v21 = vpop.f32.mrf.mxu1 }
 0x139   :  { %v524_v22 = vpop.xlane.xlu0 %523 }
 0x13a   :  { %v525_v23 = vsub.f32 %v518_v18, %v524_v22 }
 0x13c   :  { %v526_v24 = vmul.f32 1.442695, %v525_v23 }
 0x13e   :  { %811 = vpow2.f32 %v526_v24 }
 0x144   :  { %v812_v25 = vpop.eup %811 }
 0x145   :  { %v528_v26 = vsel %vm521_vm1, %v812_v25, 0.0 }
 0x146   :  { %529 = vadd.xlane.f32.xlu0 %v528_v26 }
 0x1b9   :  { %v530_v27 = vpop.xlane.xlu0 %529 }
 0x1ba   :  { %813 = vrcp.f32 %v530_v27  ;;  %v542_v31 = vand.u32 2147483648, %v530_v27  ;;  %v540_v33 = vand.u32 2147483647, %v530_v27  ;;  %vm536_vm3 = vweird.f32 %v530_v27 }
 0x1bc   :  { %v543_v35 = vor.u32 1.1754944e-38, %v542_v31  ;;  %vm541_vm5 = vcmp.eq.f32.partialorder %v540_v33, 8.507059e+37 }
 0x1c0   :  { %v814_v28 = vpop.eup %813 }
 0x1c1   :  { %v532_v29 = vmul.f32 %v814_v28, %v530_v27  ;;  %vm537_vm2 = vweird.f32 %v814_v28 }
 0x1c2   :  { %vm538_vm4 = vmor %vm536_vm3, %vm537_vm2 }
 0x1c3   :  { %v533_v30 = vsub.f32 1.0, %v532_v29 }
 0x1c5   :  { %v534_v32 = vmul.f32 %v814_v28, %v533_v30 }
 0x1c7   :  { %v535_v34 = vadd.f32 %v814_v28, %v534_v32 }
 0x1c9   :  { %v539_v36 = vsel %vm538_vm4, %v814_v28, %v535_v34 }
 0x1ca   :  { %v544_v37 = vsel %vm541_vm5, %v543_v35, %v539_v36 }
 0x1cb   :  { %v545_v38 = vmul.f32 %v812_v25, %v544_v37 }
 0x1cd   :  { %546 = vst.msk [vmem:[#allocation2] sm:$0xff] %vm521_vm1, %v545_v38 }
 0x1ce   :  { %557 = dma.vmem_to_hbm [thread:$0]  %s553_s2, 128, %s555_s19, [#allocation3]  }
 0x1cf   :  { %839 = dma.done.wait [#allocation3], 128  }
 0x1d0   :  { %840 = vsyncadd [#allocation3], 4294967168 }
 0x1d1   :  { %562 = vsyncpa [#allocation3], 1 }

</bundles_post_ra>
